<compile_context>
chip_gen: v6e
topology: v6e:2x2x1
jax: 0.10.0
libtpu: 0.0.40
codegen_flags: <defaults>
</compile_context>

<pallas_src>
import functools

import jax
import jax.numpy as jnp
from jax.experimental import pallas as pl
from jax.experimental.pallas import tpu as pltpu

L = 500   # self.L
D = 128   # self.D
K = 1     # self.K

L_PAD = 512   # next multiple of 128 >= L (lane-dense matmuls; zero-padding is exact)


def mil_attention_kernel(h_in_ref, w_fc_ref, b_fc_ref,
                         w_a1_ref, b_a1_ref,
                         w_a2t_ref, b_a2_ref,
                         w_ct_ref, b_c_ref,
                         y_prob_ref,
                         m_sc, l_sc, acc_sc,
                         *, n_valid, tile_n):
    n_idx = pl.program_id(1)

    # ---- init per-bag accumulators on the first instance tile ----------------
    @pl.when(n_idx == 0)
    def _():
        m_sc[...] = jnp.full(m_sc.shape, -jnp.inf, m_sc.dtype)
        l_sc[...] = jnp.zeros(l_sc.shape, l_sc.dtype)
        acc_sc[...] = jnp.zeros(acc_sc.shape, acc_sc.dtype)

    # (TN, F) instance-feature tile: f32 straight from HBM, bf16 cast in-kernel.
    x = h_in_ref[0].astype(jnp.bfloat16)

    # fc: Linear(F, L) + ReLU  (bf16 on the MXU, f32 accumulation)
    h = jnp.dot(x, w_fc_ref[...], preferred_element_type=jnp.float32)
    h = jnp.maximum(h + b_fc_ref[...], 0.0)                     # (TN, L_PAD) f32

    # Validity mask for the ragged last tile (and any Pallas block padding).
    rows = jax.lax.broadcasted_iota(jnp.int32, (h.shape[0], 1), 0) + n_idx * tile_n
    valid = rows < n_valid                                      # (TN, 1) bool
    # Zero invalid rows of H so padding garbage cannot reach the p^T @ H matmul.
    hb = jnp.where(valid, h, 0.0).astype(jnp.bfloat16)          # (TN, L_PAD) bf16

    # attention[0:2]: Linear(L, D) + Tanh  (tanh kept in f32)
    a1 = jnp.dot(hb, w_a1_ref[...], preferred_element_type=jnp.float32)
    a1 = jnp.tanh(a1 + b_a1_ref[...])                           # (TN, D) f32

    # attention[2]: Linear(D, K=1) as VPU multiply + lane reduce (no 1-col MXU op)
    scores = jnp.sum(a1 * w_a2t_ref[...], axis=-1, keepdims=True) + b_a2_ref[0, 0]
    scores = jnp.where(valid, scores, -jnp.inf)                 # (TN, 1)

    # online softmax over instances + running attn^T @ H accumulator
    m_prev = m_sc[...]                                          # (1, 1)
    m_new = jnp.maximum(m_prev, jnp.max(scores))
    alpha = jnp.exp(m_prev - m_new)
    p = jnp.exp(scores - m_new)                                 # (TN, 1); 0 on invalid rows
    l_sc[...] = alpha * l_sc[...] + jnp.sum(p)
    acc_sc[...] = alpha * acc_sc[...] + jax.lax.dot_general(
        p.astype(jnp.bfloat16), hb,
        (((0,), (0,)), ((), ())), preferred_element_type=jnp.float32)  # (1, L_PAD)
    m_sc[...] = m_new

    # ---- finalize on the last instance tile ----------------------------------
    @pl.when(n_idx == pl.num_programs(1) - 1)
    def _():
        # Exact divide: runs once per bag, Y_prob feeds a hard >=0.5 threshold.
        m = acc_sc[...] / l_sc[...]                                 # (1, L_PAD)
        # classifier: Linear(L*K, 1) + Sigmoid as VPU multiply + lane reduce
        logit = jnp.sum(m * w_ct_ref[...], axis=-1, keepdims=True) + b_c_ref[0, 0]
        y_prob_ref[0] = jax.nn.sigmoid(logit)                       # (1, 1) f32


def mil_attention_forward(h_in, params, *, tile_n=512):
    """h_in: (N, F) single bag or (B, N, F) batch of equal-length bags (f32).

    Returns (Y_prob, Y_hat): each (K, 1) for a single bag, (B, K, 1) batched.
    """
    squeeze_bag = h_in.ndim == 2
    if squeeze_bag:
        h_in = h_in[None]
    B, N, F = h_in.shape

    w_fc, b_fc, w_a1, b_a1, w_a2, b_a2, w_c, b_c = params

    # Pad L -> L_PAD (exact: relu(x@0 + 0) = 0 feeds zero weights downstream).
    w_fc_p = jnp.pad(w_fc, ((0, 0), (0, L_PAD - L))).astype(jnp.bfloat16)
    b_fc_p = jnp.pad(b_fc, ((0, 0), (0, L_PAD - L)))
    w_a1_p = jnp.pad(w_a1, ((0, L_PAD - L), (0, 0))).astype(jnp.bfloat16)
    w_a2_t = w_a2.T                                             # (K, D) = (1, 128), f32
    w_c_t = jnp.pad(w_c.T, ((0, 0), (0, L_PAD - L * K)))        # (1, L_PAD), f32

    # Instance-axis tiling: h_in streams directly in its stored f32 layout (no
    # host-side pad / bf16 copy). Ragged last tiles are masked in-kernel.
    if N <= tile_n:
        tn = N            # single full-extent tile (no block padding at all)
    else:
        tn = tile_n       # keep a multiple of 256 (fills v6e/v7x MXU rows)
    n_tiles = pl.cdiv(N, tn)
    grid = (B, n_tiles)

    kernel = functools.partial(mil_attention_kernel, n_valid=N, tile_n=tn)
    # TODO(synk): if bag lengths vary at runtime with a fixed padded capacity,
    # pass n_valid via scalar-prefetch/SMEM instead of baking it statically.

    def resident(shape):
        # Constant index_map => never re-fetched; single-buffer to halve the
        # resident-weight VMEM footprint.
        return pl.BlockSpec(shape, lambda b, n: (0, 0),
                            pipeline_mode=pl.Buffered(1))

    def smem_scalar():
        return pl.BlockSpec(memory_space=pltpu.MemorySpace.SMEM)

    y_prob = pl.pallas_call(
        kernel,
        out_shape=jax.ShapeDtypeStruct((B, K, 1), jnp.float32),
        grid_spec=pltpu.PrefetchScalarGridSpec(
            num_scalar_prefetch=0,
            grid=grid,
            in_specs=[
                pl.BlockSpec((1, tn, F), lambda b, n: (b, n, 0)),   # H_in tiles (f32)
                resident((F, L_PAD)),       # w_fc  (bf16)
                resident((1, L_PAD)),       # b_fc  (f32)
                resident((L_PAD, D)),       # w_a1  (bf16)
                resident((1, D)),           # b_a1  (f32)
                resident((K, D)),           # w_a2^T (f32)
                smem_scalar(),              # b_a2  (scalar, SMEM)
                resident((K, L_PAD)),       # w_c^T (f32)
                smem_scalar(),              # b_c   (scalar, SMEM)
            ],
            out_specs=pl.BlockSpec((1, K, 1), lambda b, n: (b, 0, 0)),
            scratch_shapes=[pltpu.VMEM((1, 1), jnp.float32),        # running max
                            pltpu.VMEM((1, 1), jnp.float32),        # running sum
                            pltpu.VMEM((1, L_PAD), jnp.float32)],   # attn^T @ H
        ),
        compiler_params=pltpu.CompilerParams(
            dimension_semantics=("parallel", "arbitrary"),
            vmem_limit_bytes=32 * 1024 * 1024),
    )(h_in, w_fc_p, b_fc_p, w_a1_p, b_a1, w_a2_t, b_a2, w_c_t, b_c)

    # torch.ge(Y_prob, 0.5).float() -- done in the wrapper (no extra kernel output).
    y_hat = (y_prob >= 0.5).astype(jnp.float32)
    if squeeze_bag:
        y_prob, y_hat = y_prob[0], y_hat[0]
    return y_prob, y_hat


def init_params(key, to_linear):
    """Deterministic PyTorch-style init: U(-1/sqrt(fan_in), 1/sqrt(fan_in))."""
    def linear(k, fan_in, fan_out):
        kw, kb = jax.random.split(k)
        bound = 1.0 / jnp.sqrt(jnp.float32(fan_in))
        w = jax.random.uniform(kw, (fan_in, fan_out), jnp.float32, -bound, bound)
        b = jax.random.uniform(kb, (1, fan_out), jnp.float32, -bound, bound)
        return w, b

    k1, k2, k3, k4 = jax.random.split(key, 4)
    w_fc, b_fc = linear(k1, to_linear, L)   # fc: Linear(_to_linear, L)
    w_a1, b_a1 = linear(k2, L, D)           # attention[0]: Linear(L, D)
    w_a2, b_a2 = linear(k3, D, K)           # attention[2]: Linear(D, K)
    w_c, b_c = linear(k4, L * K, 1)         # classifier[0]: Linear(L*K, 1)
    return (w_fc, b_fc, w_a1, b_a1, w_a2, b_a2, w_c, b_c)


def mil_reference(h_in, params):
    """Pure-JAX f32 reference of the PyTorch forward for a single bag (N, F)."""
    w_fc, b_fc, w_a1, b_a1, w_a2, b_a2, w_c, b_c = params
    h = jnp.maximum(h_in @ w_fc + b_fc, 0.0)                    # (N, L)
    a = jnp.tanh(h @ w_a1 + b_a1) @ w_a2 + b_a2                 # (N, K)
    a = jax.nn.softmax(a.T, axis=1)                             # (K, N)
    m = a @ h                                                   # (K, L)
    y_prob = jax.nn.sigmoid(m.reshape(1, L * K) @ w_c + b_c)    # (1, 1)
    y_hat = (y_prob >= 0.5).astype(jnp.float32)
    return y_prob, y_hat


if __name__ == "__main__":
    key = jax.random.PRNGKey(0)
    k_x, k_p, k_x2 = jax.random.split(key, 3)

    # --- module-shaped call: one bag, x is (1, N, F) like the PyTorch input ---
    N = 8
    TO_LINEAR = 256  # model._to_linear (flattened feature size per instance)
    x = jax.random.normal(k_x, (1, N, TO_LINEAR), jnp.float32)
    h_in = jnp.squeeze(x, axis=0)                               # x.squeeze(0)
    params = init_params(k_p, TO_LINEAR)

    y_prob, y_hat = mil_attention_forward(h_in, params)
    jax.block_until_ready((y_prob, y_hat))

    assert y_prob.shape == (K, 1) and y_hat.shape == (K, 1)
    y_ref, _ = mil_reference(h_in, params)
    # bf16 MXU inputs vs. the all-f32 PyTorch math: documented tolerance 5e-2
    # (the finalize / classifier path stays fully in f32 with an exact divide).
    assert bool(jnp.allclose(y_prob, y_ref, atol=5e-2)), (y_prob, y_ref)
    assert bool(jnp.all((y_prob >= 0.0) & (y_prob <= 1.0)))
    assert bool(jnp.all(y_hat == jnp.where(y_prob >= 0.5, 1.0, 0.0)))

    # --- batched multi-tile call: small tile_n here only to exercise the N
    #     streaming, ragged-tile masking and the parallel bag axis at test size
    #     (production default tile_n=512 amortizes per-step overhead).
    B2, N2 = 2, 300
    h2 = jax.random.normal(k_x2, (B2, N2, TO_LINEAR), jnp.float32)
    yp2, yh2 = mil_attention_forward(h2, params, tile_n=128)
    jax.block_until_ready((yp2, yh2))
    assert yp2.shape == (B2, K, 1) and yh2.shape == (B2, K, 1)
    ref2 = jnp.stack([mil_reference(h2[b], params)[0] for b in range(B2)])
    assert bool(jnp.allclose(yp2, ref2, atol=5e-2)), (yp2, ref2)
    assert bool(jnp.all(yh2 == jnp.where(yp2 >= 0.5, 1.0, 0.0)))

    print("KERNEL_OK")
</pallas_src>

<mosaic_0001>
module attributes {stable_mosaic.version = 11 : i64} {
  func.func @mil_attention_kernel(%arg0: i32, %arg1: i32, %arg2: memref<1x8x256xf32, #tpu.memory_space<vmem>>, %arg3: memref<256x512xbf16, #tpu.memory_space<vmem>>, %arg4: memref<1x512xf32, #tpu.memory_space<vmem>>, %arg5: memref<512x128xbf16, #tpu.memory_space<vmem>>, %arg6: memref<1x128xf32, #tpu.memory_space<vmem>>, %arg7: memref<1x128xf32, #tpu.memory_space<vmem>>, %arg8: memref<1x1xf32, #tpu.memory_space<smem>>, %arg9: memref<1x512xf32, #tpu.memory_space<vmem>>, %arg10: memref<1x1xf32, #tpu.memory_space<smem>>, %arg11: memref<1x1x1xf32, #tpu.memory_space<vmem>>, %arg12: memref<1x1xf32, #tpu.memory_space<vmem>>, %arg13: memref<1x1xf32, #tpu.memory_space<vmem>>, %arg14: memref<1x512xf32, #tpu.memory_space<vmem>>) attributes {dimension_semantics = [#tpu.dimension_semantics<parallel>, #tpu.dimension_semantics<arbitrary>], iteration_bounds = array<i64: 1, 1>, scalar_prefetch = 0 : i64, scratch_operands = 3 : i64, tpu.core_type = #tpu.core_type<tc>, window_params = [{transform_indices = @transform_0, window_bounds = array<i64: 1, 8, 256>}, {pipeline_mode = #tpu.pipeline_mode<synchronous>, transform_indices = @transform_1, window_bounds = array<i64: 256, 512>}, {pipeline_mode = #tpu.pipeline_mode<synchronous>, transform_indices = @transform_2, window_bounds = array<i64: 1, 512>}, {pipeline_mode = #tpu.pipeline_mode<synchronous>, transform_indices = @transform_3, window_bounds = array<i64: 512, 128>}, {pipeline_mode = #tpu.pipeline_mode<synchronous>, transform_indices = @transform_4, window_bounds = array<i64: 1, 128>}, {pipeline_mode = #tpu.pipeline_mode<synchronous>, transform_indices = @transform_5, window_bounds = array<i64: 1, 128>}, {transform_indices = @transform_6, window_bounds = array<i64: 1, 1>}, {pipeline_mode = #tpu.pipeline_mode<synchronous>, transform_indices = @transform_7, window_bounds = array<i64: 1, 512>}, {transform_indices = @transform_8, window_bounds = array<i64: 1, 1>}, {transform_indices = @transform_9, window_bounds = array<i64: 1, 1, 1>}]} {
    %c0_i32 = arith.constant 0 : i32
    %0 = arith.cmpi eq, %arg1, %c0_i32 : i32
    %1 = arith.extui %0 : i1 to i32
    %c0_i32_0 = arith.constant 0 : i32
    %2 = arith.cmpi ne, %1, %c0_i32_0 : i32
    scf.if %2 {
      %cst_38 = arith.constant 0xFF800000 : f32
      %72 = vector.broadcast %cst_38 : f32 to vector<1x1xf32>
      %c0_39 = arith.constant 0 : index
      %c0_40 = arith.constant 0 : index
      %73 = vector.load %arg12[%c0_39, %c0_40] : memref<1x1xf32, #tpu.memory_space<vmem>>, vector<1x1xf32>
      tpu.vector_store %arg12[%c0_39, %c0_40], %72 {strides = array<i32>} : memref<1x1xf32, #tpu.memory_space<vmem>>, vector<1x1xf32>,
      %cst_41 = arith.constant 0.000000e+00 : f32
      %74 = vector.broadcast %cst_41 : f32 to vector<1x1xf32>
      %c0_42 = arith.constant 0 : index
      %c0_43 = arith.constant 0 : index
      %75 = vector.load %arg13[%c0_42, %c0_43] : memref<1x1xf32, #tpu.memory_space<vmem>>, vector<1x1xf32>
      tpu.vector_store %arg13[%c0_42, %c0_43], %74 {strides = array<i32>} : memref<1x1xf32, #tpu.memory_space<vmem>>, vector<1x1xf32>,
      %cst_44 = arith.constant 0.000000e+00 : f32
      %76 = vector.broadcast %cst_44 : f32 to vector<1x512xf32>
      %c0_45 = arith.constant 0 : index
      %c0_46 = arith.constant 0 : index
      %77 = vector.load %arg14[%c0_45, %c0_46] : memref<1x512xf32, #tpu.memory_space<vmem>>, vector<1x512xf32>
      tpu.vector_store %arg14[%c0_45, %c0_46], %76 {strides = array<i32>} : memref<1x512xf32, #tpu.memory_space<vmem>>, vector<1x512xf32>,
    } else {
    }
    %c0 = arith.constant 0 : index
    %c0_1 = arith.constant 0 : index
    %c0_2 = arith.constant 0 : index
    %3 = vector.load %arg2[%c0, %c0_1, %c0_2] : memref<1x8x256xf32, #tpu.memory_space<vmem>>, vector<1x8x256xf32>
    %4 = vector.shape_cast %3 : vector<1x8x256xf32> to vector<8x256xf32>
    %5 = arith.truncf %4 : vector<8x256xf32> to vector<8x256xbf16>
    %c0_3 = arith.constant 0 : index
    %c0_4 = arith.constant 0 : index
    %6 = vector.load %arg3[%c0_3, %c0_4] : memref<256x512xbf16, #tpu.memory_space<vmem>>, vector<256x512xbf16>
    %cst = arith.constant dense<0.000000e+00> : vector<8x512xf32>
    %7 = tpu.matmul %5, %6, %cst {dimension_numbers = #tpu.dot_dimension_numbers<[1], [0], [0], [1], [0, 0, 1, 1], [], []>} : vector<8x256xbf16>, vector<256x512xbf16>, vector<8x512xf32> -> vector<8x512xf32>
    %c0_5 = arith.constant 0 : index
    %c0_6 = arith.constant 0 : index
    %8 = vector.load %arg4[%c0_5, %c0_6] : memref<1x512xf32, #tpu.memory_space<vmem>>, vector<1x512xf32>
    %9 = vector.broadcast %8 : vector<1x512xf32> to vector<8x512xf32>
    %10 = arith.addf %7, %9 : vector<8x512xf32>
    %cst_7 = arith.constant 0.000000e+00 : f32
    %11 = vector.broadcast %cst_7 : f32 to vector<8x512xf32>
    %12 = arith.maximumf %10, %11 : vector<8x512xf32>
    %13 = tpu.iota {dimensions = array<i32: 0>} : vector<8x1xi32>
    %c8_i32 = arith.constant 8 : i32
    %14 = arith.muli %arg1, %c8_i32 : i32
    %15 = vector.broadcast %14 : i32 to vector<8x1xi32>
    %16 = arith.addi %13, %15 : vector<8x1xi32>
    %c8_i32_8 = arith.constant 8 : i32
    %17 = vector.broadcast %c8_i32_8 : i32 to vector<8x1xi32>
    %18 = arith.cmpi slt, %16, %17 : vector<8x1xi32>
    %cst_9 = arith.constant 0.000000e+00 : f32
    %19 = vector.shape_cast %18 : vector<8x1xi1> to vector<8x1xi1>
    %20 = vector.broadcast %19 : vector<8x1xi1> to vector<8x512xi1>
    %21 = vector.broadcast %cst_9 : f32 to vector<8x512xf32>
    %22 = arith.select %20, %12, %21 : vector<8x512xi1>, vector<8x512xf32>
    %23 = arith.truncf %22 : vector<8x512xf32> to vector<8x512xbf16>
    %c0_10 = arith.constant 0 : index
    %c0_11 = arith.constant 0 : index
    %24 = vector.load %arg5[%c0_10, %c0_11] : memref<512x128xbf16, #tpu.memory_space<vmem>>, vector<512x128xbf16>
    %cst_12 = arith.constant dense<0.000000e+00> : vector<8x128xf32>
    %25 = tpu.matmul %23, %24, %cst_12 {dimension_numbers = #tpu.dot_dimension_numbers<[1], [0], [0], [1], [0, 0, 1, 1], [], []>} : vector<8x512xbf16>, vector<512x128xbf16>, vector<8x128xf32> -> vector<8x128xf32>
    %c0_13 = arith.constant 0 : index
    %c0_14 = arith.constant 0 : index
    %26 = vector.load %arg6[%c0_13, %c0_14] : memref<1x128xf32, #tpu.memory_space<vmem>>, vector<1x128xf32>
    %27 = vector.broadcast %26 : vector<1x128xf32> to vector<8x128xf32>
    %28 = arith.addf %25, %27 : vector<8x128xf32>
    %29 = math.tanh %28 : vector<8x128xf32>
    %c0_15 = arith.constant 0 : index
    %c0_16 = arith.constant 0 : index
    %30 = vector.load %arg7[%c0_15, %c0_16] : memref<1x128xf32, #tpu.memory_space<vmem>>, vector<1x128xf32>
    %31 = vector.broadcast %30 : vector<1x128xf32> to vector<8x128xf32>
    %32 = arith.mulf %29, %31 : vector<8x128xf32>
    %cst_17 = arith.constant dense<0.000000e+00> : vector<8xf32>
    %33 = vector.multi_reduction <add>, %32, %cst_17 [1] : vector<8x128xf32> to vector<8xf32>
    %34 = vector.shape_cast %33 : vector<8xf32> to vector<8x1xf32>
    %c0_18 = arith.constant 0 : index
    %c0_19 = arith.constant 0 : index
    %35 = memref.load %arg8[%c0_18, %c0_19] : memref<1x1xf32, #tpu.memory_space<smem>>
    %36 = vector.broadcast %35 : f32 to vector<8x1xf32>
    %37 = arith.addf %34, %36 : vector<8x1xf32>
    %cst_20 = arith.constant 0xFF800000 : f32
    %38 = vector.broadcast %cst_20 : f32 to vector<8x1xf32>
    %39 = arith.select %18, %37, %38 : vector<8x1xi1>, vector<8x1xf32>
    %c0_21 = arith.constant 0 : index
    %c0_22 = arith.constant 0 : index
    %40 = vector.load %arg12[%c0_21, %c0_22] : memref<1x1xf32, #tpu.memory_space<vmem>>, vector<1x1xf32>
    %41 = vector.shape_cast %39 : vector<8x1xf32> to vector<1x8x1xf32>
    %cst_23 = arith.constant dense<0xFF800000> : vector<1xf32>
    %42 = vector.multi_reduction <maximumf>, %41, %cst_23 [1, 2] : vector<1x8x1xf32> to vector<1xf32>
    %43 = vector.shape_cast %42 : vector<1xf32> to vector<1x1x1xf32>
    %44 = vector.extract %43[0, 0, 0] : f32 from vector<1x1x1xf32>
    %45 = vector.broadcast %44 : f32 to vector<1x1xf32>
    %46 = arith.maximumf %40, %45 : vector<1x1xf32>
    %47 = arith.subf %40, %46 : vector<1x1xf32>
    %48 = math.exp %47 : vector<1x1xf32>
    %49 = vector.broadcast %46 : vector<1x1xf32> to vector<8x1xf32>
    %50 = arith.subf %39, %49 : vector<8x1xf32>
    %51 = math.exp %50 : vector<8x1xf32>
    %c0_24 = arith.constant 0 : index
    %c0_25 = arith.constant 0 : index
    %52 = vector.load %arg13[%c0_24, %c0_25] : memref<1x1xf32, #tpu.memory_space<vmem>>, vector<1x1xf32>
    %53 = arith.mulf %48, %52 : vector<1x1xf32>
    %54 = vector.shape_cast %51 : vector<8x1xf32> to vector<1x8x1xf32>
    %cst_26 = arith.constant dense<0.000000e+00> : vector<1xf32>
    %55 = vector.multi_reduction <add>, %54, %cst_26 [1, 2] : vector<1x8x1xf32> to vector<1xf32>
    %56 = vector.shape_cast %55 : vector<1xf32> to vector<1x1x1xf32>
    %57 = vector.extract %56[0, 0, 0] : f32 from vector<1x1x1xf32>
    %58 = vector.broadcast %57 : f32 to vector<1x1xf32>
    %59 = arith.addf %53, %58 : vector<1x1xf32>
    %c0_27 = arith.constant 0 : index
    %c0_28 = arith.constant 0 : index
    %60 = vector.load %arg13[%c0_27, %c0_28] : memref<1x1xf32, #tpu.memory_space<vmem>>, vector<1x1xf32>
    tpu.vector_store %arg13[%c0_27, %c0_28], %59 {strides = array<i32>} : memref<1x1xf32, #tpu.memory_space<vmem>>, vector<1x1xf32>,
    %c0_29 = arith.constant 0 : index
    %c0_30 = arith.constant 0 : index
    %61 = vector.load %arg14[%c0_29, %c0_30] : memref<1x512xf32, #tpu.memory_space<vmem>>, vector<1x512xf32>
    %62 = vector.broadcast %48 : vector<1x1xf32> to vector<1x512xf32>
    %63 = arith.mulf %62, %61 : vector<1x512xf32>
    %64 = arith.truncf %51 : vector<8x1xf32> to vector<8x1xbf16>
    %cst_31 = arith.constant dense<0.000000e+00> : vector<1x512xf32>
    %65 = tpu.matmul %64, %23, %cst_31 {dimension_numbers = #tpu.dot_dimension_numbers<[0], [0], [1], [1], [0, 1, 1, 1], [], []>} : vector<8x1xbf16>, vector<8x512xbf16>, vector<1x512xf32> -> vector<1x512xf32>
    %66 = arith.addf %63, %65 : vector<1x512xf32>
    %c0_32 = arith.constant 0 : index
    %c0_33 = arith.constant 0 : index
    %67 = vector.load %arg14[%c0_32, %c0_33] : memref<1x512xf32, #tpu.memory_space<vmem>>, vector<1x512xf32>
    tpu.vector_store %arg14[%c0_32, %c0_33], %66 {strides = array<i32>} : memref<1x512xf32, #tpu.memory_space<vmem>>, vector<1x512xf32>,
    %c0_34 = arith.constant 0 : index
    %c0_35 = arith.constant 0 : index
    %68 = vector.load %arg12[%c0_34, %c0_35] : memref<1x1xf32, #tpu.memory_space<vmem>>, vector<1x1xf32>
    tpu.vector_store %arg12[%c0_34, %c0_35], %46 {strides = array<i32>} : memref<1x1xf32, #tpu.memory_space<vmem>>, vector<1x1xf32>,
    %c0_i32_36 = arith.constant 0 : i32
    %69 = arith.cmpi eq, %arg1, %c0_i32_36 : i32
    %70 = arith.extui %69 : i1 to i32
    %c0_i32_37 = arith.constant 0 : i32
    %71 = arith.cmpi ne, %70, %c0_i32_37 : i32
    scf.if %71 {
      %c0_38 = arith.constant 0 : index
      %c0_39 = arith.constant 0 : index
      %72 = vector.load %arg14[%c0_38, %c0_39] : memref<1x512xf32, #tpu.memory_space<vmem>>, vector<1x512xf32>
      %c0_40 = arith.constant 0 : index
      %c0_41 = arith.constant 0 : index
      %73 = vector.load %arg13[%c0_40, %c0_41] : memref<1x1xf32, #tpu.memory_space<vmem>>, vector<1x1xf32>
      %74 = vector.broadcast %73 : vector<1x1xf32> to vector<1x512xf32>
      %75 = arith.divf %72, %74 : vector<1x512xf32>
      %c0_42 = arith.constant 0 : index
      %c0_43 = arith.constant 0 : index
      %76 = vector.load %arg9[%c0_42, %c0_43] : memref<1x512xf32, #tpu.memory_space<vmem>>, vector<1x512xf32>
      %77 = arith.mulf %75, %76 : vector<1x512xf32>
      %cst_44 = arith.constant dense<0.000000e+00> : vector<1xf32>
      %78 = vector.multi_reduction <add>, %77, %cst_44 [1] : vector<1x512xf32> to vector<1xf32>
      %79 = vector.shape_cast %78 : vector<1xf32> to vector<1x1xf32>
      %c0_45 = arith.constant 0 : index
      %c0_46 = arith.constant 0 : index
      %80 = memref.load %arg10[%c0_45, %c0_46] : memref<1x1xf32, #tpu.memory_space<smem>>
      %81 = vector.broadcast %80 : f32 to vector<1x1xf32>
      %82 = arith.addf %79, %81 : vector<1x1xf32>
      %83 = arith.negf %82 : vector<1x1xf32>
      %84 = math.exp %83 : vector<1x1xf32>
      %cst_47 = arith.constant 1.000000e+00 : f32
      %85 = vector.broadcast %cst_47 : f32 to vector<1x1xf32>
      %86 = arith.addf %85, %84 : vector<1x1xf32>
      %87 = arith.divf %85, %86 : vector<1x1xf32>
      %c0_48 = arith.constant 0 : index
      %c0_49 = arith.constant 0 : index
      %c0_50 = arith.constant 0 : index
      %88 = vector.load %arg11[%c0_48, %c0_49, %c0_50] : memref<1x1x1xf32, #tpu.memory_space<vmem>>, vector<1x1x1xf32>
      %89 = vector.shape_cast %88 : vector<1x1x1xf32> to vector<1x1xf32>
      %90 = vector.shape_cast %87 : vector<1x1xf32> to vector<1x1x1xf32>
      tpu.vector_store %arg11[%c0_48, %c0_49, %c0_50], %90 {strides = array<i32>} : memref<1x1x1xf32, #tpu.memory_space<vmem>>, vector<1x1x1xf32>,
    } else {
    }
    return
  }
  func.func @transform_0(%arg0: i32, %arg1: i32) -> (i32, i32, i32) {
    %c0_i32 = arith.constant 0 : i32
    %c0_i32_0 = arith.constant 0 : i32
    return %arg0, %arg1, %c0_i32 : i32, i32, i32
  }
  func.func @transform_1(%arg0: i32, %arg1: i32) -> (i32, i32) {
    %c0_i32 = arith.constant 0 : i32
    %c0_i32_0 = arith.constant 0 : i32
    %c0_i32_1 = arith.constant 0 : i32
    return %c0_i32, %c0_i32_0 : i32, i32
  }
  func.func @transform_2(%arg0: i32, %arg1: i32) -> (i32, i32) {
    %c0_i32 = arith.constant 0 : i32
    %c0_i32_0 = arith.constant 0 : i32
    %c0_i32_1 = arith.constant 0 : i32
    return %c0_i32, %c0_i32_0 : i32, i32
  }
  func.func @transform_3(%arg0: i32, %arg1: i32) -> (i32, i32) {
    %c0_i32 = arith.constant 0 : i32
    %c0_i32_0 = arith.constant 0 : i32
    %c0_i32_1 = arith.constant 0 : i32
    return %c0_i32, %c0_i32_0 : i32, i32
  }
  func.func @transform_4(%arg0: i32, %arg1: i32) -> (i32, i32) {
    %c0_i32 = arith.constant 0 : i32
    %c0_i32_0 = arith.constant 0 : i32
    %c0_i32_1 = arith.constant 0 : i32
    return %c0_i32, %c0_i32_0 : i32, i32
  }
  func.func @transform_5(%arg0: i32, %arg1: i32) -> (i32, i32) {
    %c0_i32 = arith.constant 0 : i32
    %c0_i32_0 = arith.constant 0 : i32
    %c0_i32_1 = arith.constant 0 : i32
    return %c0_i32, %c0_i32_0 : i32, i32
  }
  func.func @transform_6(%arg0: i32, %arg1: i32) -> (i32, i32) {
    %c0_i32 = arith.constant 0 : i32
    %c0_i32_0 = arith.constant 0 : i32
    %c0_i32_1 = arith.constant 0 : i32
    return %c0_i32, %c0_i32_0 : i32, i32
  }
  func.func @transform_7(%arg0: i32, %arg1: i32) -> (i32, i32) {
    %c0_i32 = arith.constant 0 : i32
    %c0_i32_0 = arith.constant 0 : i32
    %c0_i32_1 = arith.constant 0 : i32
    return %c0_i32, %c0_i32_0 : i32, i32
  }
  func.func @transform_8(%arg0: i32, %arg1: i32) -> (i32, i32) {
    %c0_i32 = arith.constant 0 : i32
    %c0_i32_0 = arith.constant 0 : i32
    %c0_i32_1 = arith.constant 0 : i32
    return %c0_i32, %c0_i32_0 : i32, i32
  }
  func.func @transform_9(%arg0: i32, %arg1: i32) -> (i32, i32, i32) {
    %c0_i32 = arith.constant 0 : i32
    %c0_i32_0 = arith.constant 0 : i32
    %c0_i32_1 = arith.constant 0 : i32
    return %arg0, %c0_i32, %c0_i32_0 : i32, i32, i32
  }
}

</mosaic_0001>

<bundles_post_ra>
// kernel: tpu_custom_call.1
= control target key start
LH: loop header
LB: loop body
LE: loop exit
PB: predicated region body
PF: predicated region fallthrough
CT: control target
= control target key end

     0   :  { %16 = vsyncpa [#allocation8], 0  ;;  %s1758_s0 = inlined_call_operand.hbm [shape: f32[1,8,256], index: 0, kind: input, shape index: {}]   ;;  %s1759_s1 = inlined_call_operand.hbm [shape: bf16[256,512], index: 1, kind: input, shape index: {}]   ;;  %s1760_s2 = inlined_call_operand.vmem [shape: f32[1,512], index: 2, kind: input, shape index: {}]   ;;  %s1761_s3 = inlined_call_operand.hbm [shape: bf16[512,128], index: 3, kind: input, shape index: {}]   ;;  %s1762_s4 = inlined_call_operand.vmem [shape: f32[1,128], index: 4, kind: input, shape index: {}]   ;;  %s1763_s5 = inlined_call_operand.vmem [shape: f32[1,128], index: 5, kind: input, shape index: {}]   ;;  %s1764_s6 = inlined_call_operand.<no memory space> [shape: f32[1,1], index: 6, kind: input, shape index: {}]   ;;  %s1765_s7 = inlined_call_operand.vmem [shape: f32[1,512], index: 7, kind: input, shape index: {}]   ;;  %s1766_s8 = inlined_call_operand.<no memory space> [shape: f32[1,1], index: 8, kind: input, shape index: {}]   ;;  %s1767_s9 = inlined_call_operand.hbm [shape: f32[1,1,1], index: 9, kind: output, shape index: {}]  }
   0x1   :  { %17 = vsyncpa [#allocation11], 0 }
   0x2   :  { %18 = vsyncpa [#allocation9], 0  ;;  %s1625_s30 = smov [#allocation10]  }
   0x3   :  { %s34_s10 = sshll.u32 %s1625_s30, 4  ;;  %s35_s10 = int_to_ptr.vmem [resolvable:$true] %s34_s10 }
   0x4   :  { %s1547_s11 = scalar_lea.vmem %s35_s10, 8192  ;;  %p1552_p1 = scmp.lt.s32.totalorder %s35_s10, %s35_s10 }
   0x5   :  { %p1548_p0 = scmp.ne.s32.totalorder %s35_s10, %s1547_s11  ;;  %p1553_p2 = scmp.lt.s32.totalorder %s1547_s11, %s1547_s11 }
   0x7   :  { %p1554_p3 = por %p1553_p2, %p1552_p1 }
   0x9   :  { %p1555_p4 = pnand %p1554_p3, %p1548_p0 }
   0xb   :  { %1558 = shalt.err (!%p1555_p4)
}
   0xc   :  { %s1626_s12 = smov 256   ;;  %s1627_s13 = smov 16  }
   0xd   :  { %40 = dma.hbm_to_vmem [thread:$0]  %s1759_s1, 8192, %s35_s10, [#allocation11], %s1626_s12, %s1626_s12, %s1627_s13  }
   0xe   :  { %s1628_s16 = smov [#allocation7]   ;;  %s1629_s18 = smov [#allocation12]  }
   0xf   :  { %s25_s17 = sshll.u32 %s1628_s16, 4  ;;  %s48_s19 = sshll.u32 %s1629_s18, 4  ;;  %s26_s17 = int_to_ptr.vmem [resolvable:$true] %s25_s17  ;;  %s49_s19 = int_to_ptr.vmem [resolvable:$true] %s48_s19 }
  0x10   :  { %s1567_s20 = scalar_lea.vmem %s26_s17, 256  ;;  %p1572_p6 = scmp.lt.s32.totalorder %s26_s17, %s26_s17 }
  0x11   :  { %p1568_p5 = scmp.ne.s32.totalorder %s26_s17, %s1567_s20  ;;  %p1573_p7 = scmp.lt.s32.totalorder %s1567_s20, %s1567_s20 }
  0x13   :  { %p1574_p8 = por %p1573_p7, %p1572_p6 }
  0x15   :  { %p1575_p9 = pnand %p1574_p8, %p1568_p5 }
  0x17   :  { %1578 = shalt.err (!%p1575_p9)
}
  0x18   :  { %28 = dma.hbm_to_vmem [thread:$0]  %s1758_s0, 256, %s26_s17, [#allocation8]  }
  0x19   :  { %s1587_s23 = scalar_lea.vmem %s49_s19, 4096  ;;  %p1592_p11 = scmp.lt.s32.totalorder %s49_s19, %s49_s19 }
  0x1a   :  { %p1588_p10 = scmp.ne.s32.totalorder %s49_s19, %s1587_s23  ;;  %p1593_p12 = scmp.lt.s32.totalorder %s1587_s23, %s1587_s23 }
  0x1c   :  { %p1594_p13 = por %p1593_p12, %p1592_p11 }
  0x1e   :  { %p1595_p0 = pnand %p1594_p13, %p1588_p10 }
  0x20   :  { %1598 = shalt.err (!%p1595_p0)
}
  0x21   :  { %s1630_s1 = smov 64   ;;  %s1631_s24 = smov 4  }
  0x22   :  { %54 = dma.hbm_to_vmem [thread:$0]  %s1761_s3, 4096, %s49_s19, [#allocation11], %s1630_s1, %s1630_s1, %s1631_s24  }
  0x23   :  { %1619 = dma.done.wait [#allocation8], 256  }
  0x24   :  { %1620 = vsyncadd [#allocation8], 4294967040 }
  0x25   :  { %1621 = dma.done.wait [#allocation11], 12288  }
  0x26   :  { %1622 = vsyncadd [#allocation11], 4294955008  ;;  %v1399_v0 = vld [vmem:[#allocation10 + $0xe4] ss:$16 sps:$4 sm:$0xff]   ;;  %v1401_v1 = vld [vmem:[#allocation10 + $0xec] ss:$16 sps:$4 sm:$0xff]  }
  0x27   :  { %497 = vmatprep.subr.bf16.mxu0 %v1399_v0  ;;  %v1403_v2 = vld [vmem:[#allocation10 + $0xe0] ss:$16 sps:$4 sm:$0xff]   ;;  %v1404_v3 = vld [vmem:[#allocation10 + $0xe8] ss:$16 sps:$4 sm:$0xff]   ;;  %538 = vmatprep.subr.bf16.mxu1 %v1401_v1  ;;  %v1405_v4 = vld [vmem:[#allocation10 + $0xc4] ss:$16 sps:$4 sm:$0xff]  }
  0x28   :  { %498 = vmatpush1.bf16.msra.mxu0 %v1403_v2  ;;  %539 = vmatpush1.bf16.msra.mxu1 %v1404_v3  ;;  %v1407_v5 = vld [vmem:[#allocation10 + $0xcc] ss:$16 sps:$4 sm:$0xff]   ;;  %v1409_v6 = vld [vmem:[#allocation10 + $0xc0] ss:$16 sps:$4 sm:$0xff]   ;;  %v1410_v7 = vld [vmem:[#allocation10 + $0xc8] ss:$16 sps:$4 sm:$0xff]  }
  0x29   :  { %499 = vmatprep.subr.bf16.mxu0 %v1405_v4  ;;  %540 = vmatprep.subr.bf16.mxu1 %v1407_v5  ;;  %v1411_v8 = vld [vmem:[#allocation10 + $0xa4] ss:$16 sps:$4 sm:$0xff]   ;;  %v1413_v9 = vld [vmem:[#allocation10 + $0xac] ss:$16 sps:$4 sm:$0xff]   ;;  %v1415_v10 = vld [vmem:[#allocation10 + $0xa0] ss:$16 sps:$4 sm:$0xff]  }
  0x2a   :  { %v1416_v11 = vld [vmem:[#allocation10 + $0xa8] ss:$16 sps:$4 sm:$0xff]   ;;  %v1417_v12 = vld [vmem:[#allocation10 + $0x84] ss:$16 sps:$4 sm:$0xff]   ;;  %v1419_v13 = vld [vmem:[#allocation10 + $0x8c] ss:$16 sps:$4 sm:$0xff]  }
  0x2b   :  { %v1421_v14 = vld [vmem:[#allocation10 + $0x80] ss:$16 sps:$4 sm:$0xff]   ;;  %v1422_v15 = vld [vmem:[#allocation10 + $0x88] ss:$16 sps:$4 sm:$0xff]   ;;  %v1423_v16 = vld [vmem:[#allocation10 + $0x64] ss:$16 sps:$4 sm:$0xff]  }
  0x2c   :  { %500 = vmatpush1.bf16.msra.mxu0 %v1409_v6  ;;  %541 = vmatpush1.bf16.msra.mxu1 %v1410_v7  ;;  %v1425_v17 = vld [vmem:[#allocation10 + $0x6c] ss:$16 sps:$4 sm:$0xff]   ;;  %v1427_v18 = vld [vmem:[#allocation10 + $0x60] ss:$16 sps:$4 sm:$0xff]   ;;  %v1428_v19 = vld [vmem:[#allocation10 + $0x68] ss:$16 sps:$4 sm:$0xff]  }
  0x2d   :  { %501 = vmatprep.subr.bf16.mxu0 %v1411_v8  ;;  %542 = vmatprep.subr.bf16.mxu1 %v1413_v9  ;;  %v1429_v20 = vld [vmem:[#allocation10 + $0x44] ss:$16 sps:$4 sm:$0xff]   ;;  %v1431_v21 = vld [vmem:[#allocation10 + $0x4c] ss:$16 sps:$4 sm:$0xff]   ;;  %v1433_v22 = vld [vmem:[#allocation10 + $0x40] ss:$16 sps:$4 sm:$0xff]  }
  0x2e   :  { %v1434_v23 = vld [vmem:[#allocation10 + $0x48] ss:$16 sps:$4 sm:$0xff]   ;;  %v1435_v24 = vld [vmem:[#allocation10 + $0x24] ss:$16 sps:$4 sm:$0xff]   ;;  %v1437_v25 = vld [vmem:[#allocation10 + $0x2c] ss:$16 sps:$4 sm:$0xff]  }
  0x2f   :  { %v1439_v26 = vld [vmem:[#allocation10 + $0x20] ss:$16 sps:$4 sm:$0xff]   ;;  %v1440_v27 = vld [vmem:[#allocation10 + $0x28] ss:$16 sps:$4 sm:$0xff]   ;;  %v1441_v28 = vld [vmem:[#allocation10 + $0x4] ss:$16 sps:$4 sm:$0xff]  }
  0x30   :  { %502 = vmatpush1.bf16.msra.mxu0 %v1415_v10  ;;  %543 = vmatpush1.bf16.msra.mxu1 %v1416_v11  ;;  %v1443_v29 = vld [vmem:[#allocation10 + $0xc] ss:$16 sps:$4 sm:$0xff]   ;;  %v1445_v30 = vld [vmem:[#allocation10] ss:$16 sps:$4 sm:$0xff]   ;;  %v1446_v31 = vld [vmem:[#allocation10 + $0x8] ss:$16 sps:$4 sm:$0xff]  }
  0x31   :  { %503 = vmatprep.subr.bf16.mxu0 %v1417_v12  ;;  %544 = vmatprep.subr.bf16.mxu1 %v1419_v13  ;;  %v1447_v32 = vld [vmem:[#allocation10 + $0x1e4] ss:$16 sps:$4 sm:$0xff]   ;;  %v1449_v33 = vld [vmem:[#allocation10 + $0x1ec] ss:$16 sps:$4 sm:$0xff]   ;;  %v1451_v34 = vld [vmem:[#allocation10 + $0x1e0] ss:$16 sps:$4 sm:$0xff]  }
  0x32   :  { %v1452_v35 = vld [vmem:[#allocation10 + $0x1e8] ss:$16 sps:$4 sm:$0xff]   ;;  %v1453_v36 = vld [vmem:[#allocation10 + $0x1c4] ss:$16 sps:$4 sm:$0xff]   ;;  %v1455_v37 = vld [vmem:[#allocation10 + $0x1cc] ss:$16 sps:$4 sm:$0xff]  }
  0x33   :  { %v1457_v38 = vld [vmem:[#allocation10 + $0x1c0] ss:$16 sps:$4 sm:$0xff]   ;;  %v1458_v39 = vld [vmem:[#allocation10 + $0x1c8] ss:$16 sps:$4 sm:$0xff]   ;;  %v1459_v40 = vld [vmem:[#allocation10 + $0x1a4] ss:$16 sps:$4 sm:$0xff]  }
  0x34   :  { %504 = vmatpush1.bf16.msra.mxu0 %v1421_v14  ;;  %545 = vmatpush1.bf16.msra.mxu1 %v1422_v15  ;;  %v1461_v41 = vld [vmem:[#allocation10 + $0x1ac] ss:$16 sps:$4 sm:$0xff]   ;;  %v1463_v42 = vld [vmem:[#allocation10 + $0x1a0] ss:$16 sps:$4 sm:$0xff]   ;;  %v1464_v43 = vld [vmem:[#allocation10 + $0x1a8] ss:$16 sps:$4 sm:$0xff]  }
  0x35   :  { %505 = vmatprep.subr.bf16.mxu0 %v1423_v16  ;;  %546 = vmatprep.subr.bf16.mxu1 %v1425_v17  ;;  %v1465_v44 = vld [vmem:[#allocation10 + $0x184] ss:$16 sps:$4 sm:$0xff]   ;;  %v1467_v45 = vld [vmem:[#allocation10 + $0x18c] ss:$16 sps:$4 sm:$0xff]   ;;  %v1469_v46 = vld [vmem:[#allocation10 + $0x180] ss:$16 sps:$4 sm:$0xff]  }
  0x36   :  { %v88_v47 = vld [vmem:[#allocation7 + $0x8] sm:$0xff]  ;;  %v1471_v50 = vld [vmem:[#allocation10 + $0x164] ss:$16 sps:$4 sm:$0xff]   ;;  %v1475_v52 = vld [vmem:[#allocation10 + $0x160] ss:$16 sps:$4 sm:$0xff]   ;;  %vm1028_vm0 = vcmask 1043456  }
  0x37   :  { %v1470_v48 = vld [vmem:[#allocation10 + $0x188] ss:$16 sps:$4 sm:$0xff]   ;;  %v90_v49 = vpack.c.bf16 %v88_v47, %v88_v47  ;;  %v1473_v51 = vld [vmem:[#allocation10 + $0x16c] ss:$16 sps:$4 sm:$0xff]   ;;  %v1477_v54 = vld [vmem:[#allocation10 + $0x144] ss:$16 sps:$4 sm:$0xff]  }
  0x38   :  { %506 = vmatpush1.bf16.msra.mxu0 %v1427_v18  ;;  %547 = vmatpush1.bf16.msra.mxu1 %v1428_v19  ;;  %v1476_v53 = vld [vmem:[#allocation10 + $0x168] ss:$16 sps:$4 sm:$0xff]   ;;  %v1479_v55 = vld [vmem:[#allocation10 + $0x14c] ss:$16 sps:$4 sm:$0xff]   ;;  %v1481_v56 = vld [vmem:[#allocation10 + $0x140] ss:$16 sps:$4 sm:$0xff]  }
  0x39   :  { %507 = vmatprep.subr.bf16.mxu0 %v1429_v20  ;;  %548 = vmatprep.subr.bf16.mxu1 %v1431_v21  ;;  %v1482_v57 = vld [vmem:[#allocation10 + $0x148] ss:$16 sps:$4 sm:$0xff]   ;;  %v1483_v58 = vld [vmem:[#allocation10 + $0x124] ss:$16 sps:$4 sm:$0xff]   ;;  %v1485_v59 = vld [vmem:[#allocation10 + $0x12c] ss:$16 sps:$4 sm:$0xff]  }
  0x3a   :  { %529 = vmatprep.mubr.bf16.mxu0 %v90_v49  ;;  %570 = vmatprep.mubr.bf16.mxu1 %v90_v49  ;;  %v1487_v60 = vld [vmem:[#allocation10 + $0x120] ss:$16 sps:$4 sm:$0xff]   ;;  %v1488_v61 = vld [vmem:[#allocation10 + $0x128] ss:$16 sps:$4 sm:$0xff]   ;;  %v1489_v62 = vld [vmem:[#allocation10 + $0x104] ss:$16 sps:$4 sm:$0xff]  }
  0x3b   :  { %v1491_v63 = vld [vmem:[#allocation10 + $0x10c] ss:$16 sps:$4 sm:$0xff]   ;;  %v1493_v0 = vld [vmem:[#allocation10 + $0x100] ss:$16 sps:$4 sm:$0xff]   ;;  %v1494_v1 = vld [vmem:[#allocation10 + $0x108] ss:$16 sps:$4 sm:$0xff]  }
  0x3c   :  { %508 = vmatpush1.bf16.msra.mxu0 %v1433_v22  ;;  %549 = vmatpush1.bf16.msra.mxu1 %v1434_v23  ;;  %v87_v2 = vld [vmem:[#allocation7] sm:$0xff]  ;;  %v1495_v3 = vld [vmem:[#allocation12 + $0x78] sm:$0xff]   ;;  %v1503_v12 = vld [vmem:[#allocation12 + $0x68] sm:$0xff]   ;;  %vm79_vm1 = vcmask 0   ;;  %vm981_vm2 = vcmask 7168   ;;  %vm1024_vm3 = vcmask 64512  }
  0x3d   :  { %509 = vmatprep.subr.bf16.mxu0 %v1435_v24  ;;  %550 = vmatprep.subr.bf16.mxu1 %v1437_v25  ;;  %v1496_v4 = vld [vmem:[#allocation12 + $0xf8] sm:$0xff]   ;;  %v89_v6 = vpack.c.bf16 %v87_v2, %v87_v2  ;;  %v1499_v8 = vld [vmem:[#allocation12 + $0x70] sm:$0xff]   ;;  %v1504_v13 = vld [vmem:[#allocation12 + $0xe8] sm:$0xff]   ;;  %vm1198_vm5 = vcmask 1040384   ;;  %s1636_s13 = smov [#allocation13]  }
  0x3e   :  { %v1497_v5 = vld [vmem:[#allocation12 + $0x38] sm:$0xff]   ;;  %v1500_v9 = vld [vmem:[#allocation12 + $0xf0] sm:$0xff]   ;;  %v1505_v14 = vld [vmem:[#allocation12 + $0x28] sm:$0xff]   ;;  %s1224_s14 = sshll.u32 %s1636_s13, 4  ;;  %s1225_s14 = int_to_ptr.vmem [resolvable:$true] %s1224_s14 }
  0x3f   :  { %v1498_v7 = vld [vmem:[#allocation12 + $0xb8] sm:$0xff]   ;;  %v1501_v10 = vld [vmem:[#allocation12 + $0x30] sm:$0xff]   ;;  %v1506_v15 = vld [vmem:[#allocation12 + $0xa8] sm:$0xff]   ;;  %s1599_s15 = scalar_lea.vmem %s1225_s14, 16  ;;  %s1603_s16 = scalar_lea.vmem %s1225_s14, 32 }
  0x40   :  { %510 = vmatpush1.bf16.msra.mxu0 %v1439_v26  ;;  %551 = vmatpush1.bf16.msra.mxu1 %v1440_v27  ;;  %v1502_v11 = vld [vmem:[#allocation12 + $0xb0] sm:$0xff]   ;;  %v1507_v16 = vld [vmem:[#allocation12 + $0x60] sm:$0xff]   ;;  %v1511_v20 = vld [vmem:[#allocation12 + $0x58] sm:$0xff]   ;;  %p1600_p1 = scmp.ne.s32.totalorder %s1225_s14, %s1599_s15  ;;  %p1604_p2 = scmp.lt.s32.totalorder %s1225_s14, %s1225_s14 }
  0x41   :  { %511 = vmatprep.subr.bf16.mxu0 %v1441_v28  ;;  %552 = vmatprep.subr.bf16.mxu1 %v1443_v29  ;;  %v1508_v17 = vld [vmem:[#allocation12 + $0xe0] sm:$0xff]   ;;  %v1512_v21 = vld [vmem:[#allocation12 + $0xd8] sm:$0xff]   ;;  %v1515_v24 = vld [vmem:[#allocation12 + $0x50] sm:$0xff]   ;;  %p1605_p3 = scmp.lt.s32.totalorder %s1603_s16, %s1599_s15 }
  0x42   :  { %v1509_v18 = vld [vmem:[#allocation12 + $0x20] sm:$0xff]   ;;  %v1513_v22 = vld [vmem:[#allocation12 + $0x18] sm:$0xff]   ;;  %v1516_v25 = vld [vmem:[#allocation12 + $0xd0] sm:$0xff]  }
  0x43   :  { %v1510_v19 = vld [vmem:[#allocation12 + $0xa0] sm:$0xff]   ;;  %v1514_v23 = vld [vmem:[#allocation12 + $0x98] sm:$0xff]   ;;  %v1517_v26 = vld [vmem:[#allocation12 + $0x10] sm:$0xff]   ;;  %p1606_p4 = por %p1605_p3, %p1604_p2 }
  0x44   :  { %512 = vmatpush1.bf16.msra.mxu0 %v1445_v30  ;;  %553 = vmatpush1.bf16.msra.mxu1 %v1446_v31  ;;  %v1518_v27 = vld [vmem:[#allocation12 + $0x90] sm:$0xff]   ;;  %v1519_v28 = vld [vmem:[#allocation12 + $0x48] sm:$0xff]  }
  0x45   :  { %513 = vmatprep.subr.bf16.mxu0 %v1447_v32  ;;  %554 = vmatprep.subr.bf16.mxu1 %v1449_v33  ;;  %v1520_v29 = vld [vmem:[#allocation12 + $0xc8] sm:$0xff]   ;;  %v1523_v32 = vld [vmem:[#allocation12 + $0x40] sm:$0xff]   ;;  %p1607_p5 = pnand %p1606_p4, %p1600_p1 }
  0x46   :  { %v1521_v30 = vld [vmem:[#allocation12 + $0x8] sm:$0xff]   ;;  %v1524_v33 = vld [vmem:[#allocation12 + $0xc0] sm:$0xff]  }
  0x47   :  { %v1522_v31 = vld [vmem:[#allocation12 + $0x88] sm:$0xff]  }
  0x48   :  { %514 = vmatpush2.bf16.msra.mxu0 %v1451_v34  ;;  %555 = vmatpush2.bf16.msra.mxu1 %v1452_v35  ;;  %v1525_v34 = vld [vmem:[#allocation12] sm:$0xff]  }
  0x49   :  { %515 = vmatprep.subr.bf16.mxu0 %v1453_v36  ;;  %556 = vmatprep.subr.bf16.mxu1 %v1455_v37  ;;  %v1526_v35 = vld [vmem:[#allocation12 + $0x80] sm:$0xff]   ;;  %v82_v36 = vlaneseq }
  0x4b   :  { %v1697_v37 = vshrl.u32 %v82_v36, 7  ;;  %vm1730_vm4 = vcmp.lt.s32.totalorder %v82_v36, 512 }
  0x4c   :  { %516 = vmatpush2.bf16.msra.mxu0 %v1457_v38  ;;  %557 = vmatpush2.bf16.msra.mxu1 %v1458_v39 }
  0x4d   :  { %517 = vmatprep.subr.bf16.mxu0 %v1459_v40  ;;  %558 = vmatprep.subr.bf16.mxu1 %v1461_v41  ;;  %v1700_v38 = vsub.s32 0, %v1697_v37  ;;  %v167_v39 = vsub.s32 2, %v1697_v37  ;;  %v155_v40 = vld [vmem:[%s1760_s2] sm:$0xf]  ;;  %v163_v41 = vsub.s32 1, %v1697_v37 }
  0x50   :  { %518 = vmatpush2.bf16.msra.mxu0 %v1463_v42  ;;  %559 = vmatpush2.bf16.msra.mxu1 %v1464_v43  ;;  %v171_v42 = vsub.s32 3, %v1697_v37  ;;  %v160_v43 = vrot.slane %v155_v40, %v1700_v38 }
  0x51   :  { %519 = vmatprep.subr.bf16.mxu0 %v1465_v44  ;;  %560 = vmatprep.subr.bf16.mxu1 %v1467_v45  ;;  %v168_v44 = vrot.slane %v155_v40, %v167_v39  ;;  %v164_v45 = vrot.slane %v155_v40, %v163_v41 }
  0x54   :  { %520 = vmatpush2.bf16.msra.mxu0 %v1469_v46  ;;  %561 = vmatpush2.bf16.msra.mxu1 %v1470_v48  ;;  %v172_v46 = vrot.slane %v155_v40, %v171_v42 }
  0x55   :  { %521 = vmatprep.subr.bf16.mxu0 %v1471_v50  ;;  %562 = vmatprep.subr.bf16.mxu1 %v1473_v51 }
  0x58   :  { %522 = vmatpush2.bf16.msra.mxu0 %v1475_v52  ;;  %563 = vmatpush2.bf16.msra.mxu1 %v1476_v53 }
  0x59   :  { %523 = vmatprep.subr.bf16.mxu0 %v1477_v54  ;;  %564 = vmatprep.subr.bf16.mxu1 %v1479_v55 }
  0x5c   :  { %524 = vmatpush2.bf16.msra.mxu0 %v1481_v56  ;;  %565 = vmatpush2.bf16.msra.mxu1 %v1482_v57 }
  0x5d   :  { %525 = vmatprep.subr.bf16.mxu0 %v1483_v58  ;;  %566 = vmatprep.subr.bf16.mxu1 %v1485_v59 }
  0x60   :  { %526 = vmatpush2.bf16.msra.mxu0 %v1487_v60  ;;  %567 = vmatpush2.bf16.msra.mxu1 %v1488_v61 }
  0x61   :  { %527 = vmatprep.subr.bf16.mxu0 %v1489_v62  ;;  %568 = vmatprep.subr.bf16.mxu1 %v1491_v63 }
  0x64   :  { %528 = vmatpush2.bf16.msra.mxu0 %v1493_v0  ;;  %569 = vmatpush2.bf16.msra.mxu1 %v1494_v1 }
  0x65   :  { %1337 = vmatprep.subr.bf16.mxu0 %v1495_v3  ;;  %1359 = vmatprep.subr.bf16.mxu1 %v1496_v4 }
  0x67   :  { %530 = vmatmul.mubr.bf16.vlgmr.msra.gmra.mxu0 %v89_v6  ;;  %571 = vmatmul.mubr.bf16.vlgmr.msra.gmra.mxu1 %v89_v6 }
  0x68   :  { %1338 = vmatpush3.bf16.msra.mxu0 %v1497_v5  ;;  %1360 = vmatpush3.bf16.msra.mxu1 %v1498_v7  ;;  %v1298_v7 = vld [vmem:[%s1762_s4] ss:$0 sm:$0xff] }
  0x69   :  { %1339 = vmatprep.subr.bf16.mxu0 %v1499_v8  ;;  %1361 = vmatprep.subr.bf16.mxu1 %v1500_v9 }
  0x6c   :  { %1340 = vmatpush3.bf16.msra.mxu0 %v1501_v10  ;;  %1362 = vmatpush3.bf16.msra.mxu1 %v1502_v11 }
  0x6d   :  { %1341 = vmatprep.subr.bf16.mxu0 %v1503_v12  ;;  %1363 = vmatprep.subr.bf16.mxu1 %v1504_v13 }
  0x70   :  { %1342 = vmatpush3.bf16.msra.mxu0 %v1505_v14  ;;  %1364 = vmatpush3.bf16.msra.mxu1 %v1506_v15 }
  0x71   :  { %1343 = vmatprep.subr.bf16.mxu0 %v1507_v16  ;;  %1365 = vmatprep.subr.bf16.mxu1 %v1508_v17 }
  0x74   :  { %1344 = vmatpush3.bf16.msra.mxu0 %v1509_v18  ;;  %1366 = vmatpush3.bf16.msra.mxu1 %v1510_v19  ;;  %v1331_v18 = vld [vmem:[%s1763_s5] ss:$0 sm:$0xff] }
  0x75   :  { %1345 = vmatprep.subr.bf16.mxu0 %v1511_v20  ;;  %1367 = vmatprep.subr.bf16.mxu1 %v1512_v21  ;;  %v1632_v21 = vmov -inf  }
  0x76   :  { %80 = vst.msk [vmem:[#allocation2] sm:$0x1] %vm79_vm1, %v1632_v21 }
  0x78   :  { %1346 = vmatpush3.bf16.msra.mxu0 %v1513_v22  ;;  %1368 = vmatpush3.bf16.msra.mxu1 %v1514_v23  ;;  %v1633_v22 = vmov 0.0   ;;  %v1634_v23 = vmov 0  }
  0x79   :  { %1347 = vmatprep.subr.bf16.mxu0 %v1515_v24  ;;  %1369 = vmatprep.subr.bf16.mxu1 %v1516_v25  ;;  %81 = vst.msk [vmem:[#allocation3] sm:$0x1] %vm79_vm1, %v1633_v22  ;;  %v954_v24 = vstv %s1764_s6 }
  0x7a   :  { %1397 = vset.pattern.permute.xlu1 %v1634_v23  ;;  %86 = vst.msk [vmem:[#allocation4] sm:$0xf] %vm1730_vm4, %v1633_v22 }
  0x7c   :  { %1348 = vmatpush3.bf16.msra.mxu0 %v1517_v26  ;;  %1370 = vmatpush3.bf16.msra.mxu1 %v1518_v27 }
  0x7d   :  { %1349 = vmatprep.subr.bf16.mxu0 %v1519_v28  ;;  %1371 = vmatprep.subr.bf16.mxu1 %v1520_v29 }
  0x80   :  { %1350 = vmatpush3.bf16.msra.mxu0 %v1521_v30  ;;  %1372 = vmatpush3.bf16.msra.mxu1 %v1522_v31 }
  0x81   :  { %1351 = vmatprep.subr.bf16.mxu0 %v1523_v32  ;;  %1373 = vmatprep.subr.bf16.mxu1 %v1524_v33  ;;  %v957_v33 = vld [vmem:[#allocation2] sm:$0x1] }
  0x84   :  { %1352 = vmatpush3.bf16.msra.mxu0 %v1525_v34  ;;  %1374 = vmatpush3.bf16.msra.mxu1 %v1526_v35 }
 0x127   :  { %v531_v47 = vpop.f32.mrf.mxu0  ;;  %v572_v48 = vpop.f32.mrf.mxu1 }
 0x128   :  { %v532_v49 = vadd.f32 %v531_v47, %v160_v43  ;;  %v573_v50 = vadd.f32 %v572_v48, %v168_v44 }
 0x129   :  { %v533_v51 = vpop.f32.mrf.mxu0  ;;  %v574_v52 = vpop.f32.mrf.mxu1 }
 0x12a   :  { %v579_v53 = vmax.f32 %v532_v49, 0.0  ;;  %v581_v54 = vmax.f32 %v573_v50, 0.0  ;;  %v534_v55 = vadd.f32 %v533_v51, %v164_v45  ;;  %v575_v56 = vadd.f32 %v574_v52, %v172_v46 }
 0x12b   :  { %v535_v57 = vpop.f32.mrf.mxu0  ;;  %v576_v58 = vpop.f32.mrf.mxu1 }
 0x12c   :  { %v597_v59 = vpack.c.bf16 %v581_v54, %v581_v54  ;;  %v580_v60 = vmax.f32 %v534_v55, 0.0  ;;  %v582_v61 = vmax.f32 %v575_v56, 0.0  ;;  %v595_v0 = vpack.c.bf16 %v579_v53, %v579_v53 }
 0x12d   :  { %v536_v62 = vpop.f32.mrf.mxu0  ;;  %v577_v63 = vpop.f32.mrf.mxu1 }
 0x12e   :  { %v596_v1 = vpack.c.bf16 %v580_v60, %v580_v60  ;;  %v598_v2 = vpack.c.bf16 %v582_v61, %v582_v61  ;;  %v1036_v3 = vsel %vm1028_vm0, %v597_v59, 0  ;;  %v1030_v4 = vsel %vm1028_vm0, %v595_v0, 0 }
 0x130   :  { %894 = vmatprep.mubr.bf16.mxu0 %v596_v1  ;;  %934 = vmatprep.mubr.bf16.mxu1 %v598_v2 }
 0x131   :  { %1332 = vmatprep.subr.msk.bf16.mxu0 %vm1028_vm0, %v596_v1  ;;  %1334 = vmatprep.subr.msk.bf16.mxu1 %vm1028_vm0, %v598_v2 }
 0x132   :  { %895 = vmatmul.mubr.bf16.vlgmr.msra.gmra.mxu0 %v595_v0  ;;  %935 = vmatmul.mubr.bf16.vlgmr.msra.gmra.mxu1 %v597_v59  ;;  %v979_v59 = vld [vmem:[#allocation3] sm:$0x1] }
 0x133   :  { %1056 = vmatpush1.bf16.msra.mxu0 %v1030_v4  ;;  %1097 = vmatpush1.bf16.msra.mxu1 %v1036_v3 }
 0x134   :  { %1073 = vmatprep.mubr.bf16.mxu0 %v1634_v23  ;;  %1114 = vmatprep.mubr.bf16.mxu1 %v1634_v23 }
 0x1f2   :  { %v1353_v5 = vpop.f32.mrf.mxu0  ;;  %v1375_v6 = vpop.f32.mrf.mxu1 }
 0x1f4   :  { %v1354_v8 = vpop.f32.mrf.mxu0  ;;  %v1376_v9 = vpop.f32.mrf.mxu1 }
 0x1f5   :  { %v1355_v10 = vadd.f32 %v1354_v8, %v1353_v5  ;;  %v1377_v14 = vadd.f32 %v1376_v9, %v1375_v6  ;;  %v1635_v9 = vmov 1966171168  }
 0x1f6   :  { %v1356_v11 = vpop.f32.mrf.mxu0  ;;  %v1378_v12 = vpop.f32.mrf.mxu1 }
 0x1f7   :  { %v897_v13 = vadd.f32 %v1355_v10, %v1298_v7  ;;  %v1130_v10 = vunpack.c.l.s4 %v1635_v9 }
 0x1f8   :  { %v1357_v15 = vpop.f32.mrf.mxu0  ;;  %v1379_v16 = vpop.f32.mrf.mxu1 }
 0x1f9   :  { %v937_v17 = vadd.f32 %v1377_v14, %v897_v13  ;;  %v1131_v36 = vunpack.c.0.s8 %v1130_v10 }
 0x1fb   :  { %1527 = vtanh.f32 %v937_v17  ;;  %v1134_v12 = vsub.s32 %v1131_v36, %v1697_v37 }
 0x208   :  { %v1528_v19 = vpop.eup %1527 }
 0x209   :  { %v950_v20 = vmul.f32 %v1528_v19, %v1331_v18  ;;  %v996_v19 = vld [vmem:[#allocation4] sm:$0xf] }
 0x20b   :  { %951 = vadd.xlane.f32.xlu0 %v950_v20 }
 0x294   :  { %v952_v25 = vpop.xlane.xlu0 %951 }
 0x295   :  { %v955_v26 = vadd.f32 %v954_v24, %v952_v25 }
 0x297   :  { %v958_v27 = vrot.slane %v955_v26, 4 }
 0x299   :  { %v959_v28 = vmax.f32 %v955_v26, %v958_v27  ;;  %v1175_v27 = vld [vmem:[%s1765_s7] sm:$0xf] }
 0x29b   :  { %v960_v29 = vrot.slane %v959_v28, 2 }
 0x29d   :  { %v961_v30 = vmax.f32 %v959_v28, %v960_v29 }
 0x29f   :  { %v962_v31 = vrot.slane %v961_v30, 1 }
 0x2a1   :  { %v963_v32 = vmax.f32 %v961_v30, %v962_v31 }
 0x2a3   :  { %1381 = vpush %v963_v32 }
 0x2d4   :  { %s1382_s5 = spop %1381 }
 0x2d5   :  { %v965_v34 = vstv %s1382_s5 }
 0x2d6   :  { %v966_v35 = vmax.f32 %v957_v33, %v965_v34 }
 0x2d8   :  { %v967_v40 = vsub.f32 %v957_v33, %v966_v35  ;;  %v974_v43 = vrot.slane %v966_v35, %v1700_v38  ;;  %1158 = vst.msk [vmem:[#allocation2] sm:$0x1] %vm79_vm1, %v966_v35 }
 0x2da   :  { %v976_v44 = vsub.f32 %v955_v26, %v974_v43  ;;  %v968_v57 = vmul.f32 1.442695, %v967_v40 }
 0x2dc   :  { %v977_v45 = vmul.f32 1.442695, %v976_v44 }
 0x2de   :  { %1529 = vpow2.f32 %v977_v45 }
 0x2df   :  { %1531 = vpow2.f32 %v968_v57 }
 0x2eb   :  { %v1530_v46 = vpop.eup %1529 }
 0x2ec   :  { %v982_v47 = vsel %vm981_vm2, %v1530_v46, 0.0  ;;  %v1007_v48 = vpack.c.bf16 %v1530_v46, %v1530_v46  ;;  %v1532_v58 = vpop.eup %1531 }
 0x2ed   :  { %983 = vadd.xlane.f32.xlu1 %v982_v47  ;;  %v980_v60 = vmul.f32 %v1532_v58, %v979_v59 }
 0x2ee   :  { %1008 = vxpose.xlu0.c.b16.start.end [1/1] (short) (narrow) %v1007_v48, 16 }
 0x2f7   :  { %1398 = vset.pattern.permute.xlu0 %v1634_v23 }
 0x350   :  { %v1016_v49 = vpop.trf.xlu0 }
 0x351   :  { %1333 = vmatmul.mubr.msk.bf16.vlgmr.msra.gmra.mxu0 %vm1024_vm3, %v1016_v49  ;;  %1335 = vmatmul.mubr.msk.bf16.vlgmr.msra.gmra.mxu1 %vm1024_vm3, %v1016_v49 }
 0x376   :  { %v984_v50 = vpop.xlane.xlu1 %983 }
 0x377   :  { %v985_v51 = vrot.slane %v984_v50, 4 }
 0x379   :  { %v986_v52 = vadd.f32 %v985_v51, %v984_v50 }
 0x37b   :  { %v987_v53 = vrot.slane %v986_v52, 2 }
 0x37d   :  { %v988_v54 = vadd.f32 %v987_v53, %v986_v52 }
 0x37f   :  { %v989_v55 = vrot.slane %v988_v54, 1 }
 0x381   :  { %v990_v56 = vadd.f32 %v989_v55, %v988_v54 }
 0x383   :  { %1383 = vpush %v990_v56 }
 0x3b4   :  { %s1384_s6 = spop %1383 }
 0x3b5   :  { %v992_v61 = vstv %s1384_s6 }
 0x3b6   :  { %v993_v62 = vadd.f32 %v992_v61, %v980_v60 }
 0x3b8   :  { %995 = vst.msk [vmem:[#allocation3] sm:$0x1] %vm79_vm1, %v993_v62 }
 0x3bf   :  { %v1163_v0 = vld [vmem:[#allocation3] sm:$0x1] }
 0x3c0   :  { %1166 = vperm.xlu1 %1397, %v1163_v0  }
 0x3c4   :  { %999 = vperm.xlu1 %1397, %v1532_v58  }
 0x411   :  { %v1075_v1 = vpop.f32.mrf.mxu0  ;;  %v1116_v2 = vpop.f32.mrf.mxu1 }
 0x413   :  { %v1077_v3 = vpop.f32.mrf.mxu0  ;;  %v1118_v4 = vpop.f32.mrf.mxu1 }
 0x414   :  { %v1127_v11 = vcombine.low %v1075_v1, %v1077_v3  ;;  %v1128_v13 = vcombine.low %v1116_v2, %v1118_v4 }
 0x415   :  { %v1079_v5 = vpop.f32.mrf.mxu0  ;;  %v1120_v6 = vpop.f32.mrf.mxu1 }
 0x416   :  { %v1135_v14 = vrot.slane %v1127_v11, %v1134_v12  ;;  %v1142_v15 = vrot.slane %v1128_v13, %v1134_v12 }
 0x417   :  { %v1080_v7 = vpop.f32.mrf.mxu0  ;;  %v1121_v8 = vpop.f32.mrf.mxu1 }
 0x418   :  { %v1143_v18 = vcombine.low %v1135_v14, %v1142_v15 }
 0x41a   :  { %v1150_v22 = vrot.slane %v1143_v18, %v1134_v12 }
 0x43b   :  { %v1167_v16 = vpop.permute.xlu1 %1166 }
 0x43c   :  { %v1172_v17 = vrot.slane %v1167_v16, %v1700_v38 }
 0x43e   :  { %1533 = vrcp.f32 %v1172_v17 }
 0x43f   :  { %v1000_v20 = vpop.permute.xlu1 %999 }
 0x440   :  { %v1005_v21 = vrot.slane %v1000_v20, %v1700_v38 }
 0x442   :  { %v1006_v23 = vmul.f32 %v1005_v21, %v996_v19 }
 0x444   :  { %v1152_v24 = vadd.f32 %v1150_v22, %v1006_v23 }
 0x446   :  { %1157 = vst.msk [vmem:[#allocation4] sm:$0xf] %vm1730_vm4, %v1152_v24 }
 0x44b   :  { %v1534_v25 = vpop.eup %1533 }
 0x44d   :  { %v1162_v26 = vld [vmem:[#allocation4] sm:$0xf] }
 0x44e   :  { %v1174_v28 = vmul.f32 %v1534_v25, %v1162_v26 }
 0x450   :  { %v1176_v29 = vmul.f32 %v1175_v27, %v1174_v28 }
 0x452   :  { %v1181_v30 = vrot.slane %v1176_v29, %v1700_v38  ;;  %v1185_v31 = vrot.slane %v1176_v29, %v163_v41  ;;  %v1189_v32 = vrot.slane %v1176_v29, %v167_v39  ;;  %v1193_v33 = vrot.slane %v1176_v29, %v171_v42 }
 0x453   :  { %v1209_v38 = vstv %s1766_s8 }
 0x454   :  { %v1199_v34 = vsel %vm1198_vm5, %v1181_v30, 0.0  ;;  %v1200_v35 = vsel %vm1198_vm5, %v1185_v31, 0.0  ;;  %v1202_v43 = vsel %vm1198_vm5, %v1189_v32, 0.0  ;;  %v1204_v45 = vsel %vm1198_vm5, %v1193_v33, 0.0 }
 0x455   :  { %v1201_v40 = vadd.f32 %v1200_v35, %v1199_v34 }
 0x457   :  { %v1203_v44 = vadd.f32 %v1202_v43, %v1201_v40 }
 0x459   :  { %v1205_v46 = vadd.f32 %v1204_v45, %v1203_v44 }
 0x45b   :  { %1206 = vadd.xlane.f32.xlu1 %v1205_v46 }
 0x4e4   :  { %v1207_v47 = vpop.xlane.xlu1 %1206 }
 0x4e5   :  { %v1210_v41 = vadd.f32 %v1209_v38, %v1207_v47 }
 0x4e7   :  { %v1336_v48 = vmul.f32 -1.442695, %v1210_v41 }
 0x4e9   :  { %1535 = vpow2.f32 %v1336_v48 }
 0x4f6   :  { %v1536_v39 = vpop.eup %1535 }
 0x4f7   :  { %v1214_v49 = vadd.f32 1.0, %v1536_v39 }
 0x4f9   :  { %1537 = vrcp.f32 %v1214_v49 }
 0x506   :  { %v1538_v37 = vpop.eup %1537 }
 0x507   :  { %1217 = vst.msk [vmem:[#allocation13] sm:$0x1] %vm79_vm1, %v1538_v37 }
 0x508   :  { %1610 = shalt.err (!%p1607_p5)
}
 0x509   :  { %1227 = dma.vmem_to_hbm [thread:$0]  %s1225_s14, 16, %s1767_s9, [#allocation9]  }
 0x50a   :  { %1623 = dma.done.wait [#allocation9], 16  }
 0x50b   :  { %1624 = vsyncadd [#allocation9], 4294967280 }
 0x50c   :  { %1231 = vsyncpa [#allocation8], 1 }
 0x50d   :  { %1232 = vsyncpa [#allocation11], 1 }
 0x50e   :  { %1233 = vsyncpa [#allocation9], 1 }

</bundles_post_ra>
